<compile_context>
chip_gen: v7x
topology: tpu7x:2x2x1
jax: 0.10.0
libtpu: 0.0.40
codegen_flags: <defaults>
</compile_context>

<pallas_src>
import functools

import jax
import jax.numpy as jnp
from jax import lax
from jax.experimental import pallas as pl
from jax.experimental.pallas import tpu as pltpu


def _sobel_kernel(x_ref, o_ref, *, W):
    """x_ref / o_ref: (H*W, Bb) tiles; rows = flattened (h, w), lanes = batch."""
    x = x_ref[...].astype(jnp.float32)
    HW, Bb = x.shape

    # Flat row index -> boundary masks (zero halo of conv2d padding=1).
    r = lax.broadcasted_iota(jnp.int32, (HW, Bb), 0)
    w = r % W
    mask_e = w < (W - 1)      # x[h, w+1] in range
    mask_w = w > 0            # x[h, w-1] in range
    mask_s = r < (HW - W)     # x[h+1, w] in range
    mask_n = r >= W           # x[h-1, w] in range

    def shift(v, amt, mask):
        # result[row] = v[row + amt], zeroed outside the image.
        # jnp.roll semantics: roll(v, s)[i] = v[i - s]  =>  s = (-amt) mod HW.
        rolled = pltpu.roll(v, shift=(-amt) % HW, axis=0)
        return jnp.where(mask, rolled, 0.0)

    # Horizontal pass (along W): derivative and [1, 2, 1] smoothing.
    x_e = shift(x, 1, mask_e)        # x[h, w+1]
    x_w = shift(x, -1, mask_w)       # x[h, w-1]
    t = x_e - x_w                    # d/dw
    s = x_w + 2.0 * x + x_e          # smooth along w

    # Vertical pass (along H): smooth t -> weight_v conv, diff s -> weight_h conv.
    x1 = shift(t, -W, mask_n) + 2.0 * t + shift(t, W, mask_s)
    x2 = shift(s, W, mask_s) - shift(s, -W, mask_n)

    o_ref[...] = jnp.sqrt(x1 * x1 + x2 * x2 + 1e-6).astype(o_ref.dtype)


def _pick_block_batch(B, H, W, itemsize=4, target_bytes=2 << 20):
    """Choose a batch tile so each (H*W, Bb) f32 tile is ~2 MiB (double-buffered
    in+out fits well inside v5e/v6e/v7x scoped VMEM) and Bb stays lane-dense."""
    per_image = H * W * itemsize
    bb = target_bytes // max(per_image, 1)
    if bb >= B or bb < 128:
        # Small batch (or a huge image): one block over the whole batch.
        # Very large H*W with a large batch would additionally tile H with a
        # halo; not needed at these sizes.
        return B
    return (bb // 128) * 128


def sobel_net(x, *, block_batch=None):
    """x: (N, 1, H, W) float32 -> (N, 1, H, W) float32, matching SobelNet.forward."""
    N, C, H, W = x.shape
    assert C == 1, "SobelNet uses single-channel 3x3 weights"
    B = N * C
    HW = H * W

    # Lane-dense layout plumbing (done by XLA outside the kernel): batch last.
    xt = x.reshape(B, HW).T                       # (H*W, B)

    bb = block_batch if block_batch is not None else _pick_block_batch(B, H, W)
    n_blocks = pl.cdiv(B, bb)
    Bp = n_blocks * bb
    if Bp != B:
        xt = jnp.pad(xt, ((0, 0), (0, Bp - B)))   # pad only the tiny batch remainder

    kernel = functools.partial(_sobel_kernel, W=W)

    out = pl.pallas_call(
        kernel,
        out_shape=jax.ShapeDtypeStruct((HW, Bp), x.dtype),
        grid_spec=pltpu.PrefetchScalarGridSpec(
            num_scalar_prefetch=0,
            grid=(n_blocks,),
            in_specs=[pl.BlockSpec((HW, bb), lambda b: (0, b))],
            out_specs=pl.BlockSpec((HW, bb), lambda b: (0, b)),
        ),
        compiler_params=pltpu.CompilerParams(
            dimension_semantics=("parallel",),
            vmem_limit_bytes=48 * 1024 * 1024,
        ),
        cost_estimate=pl.CostEstimate(
            flops=20 * HW * Bp,
            transcendentals=HW * Bp,
            bytes_accessed=2 * 4 * HW * Bp,
        ),
    )(xt)

    out = out[:, :B].T                            # (B, H*W)
    return out.reshape(N, C, H, W)


def _sobel_reference(x):
    """Pure-JAX reference (lax.conv) for correctness checking."""
    wv = jnp.array([[-1.0, 0.0, 1.0], [-2.0, 0.0, 2.0], [-1.0, 0.0, 1.0]],
                   jnp.float32).reshape(1, 1, 3, 3)
    wh = jnp.array([[-1.0, -2.0, -1.0], [0.0, 0.0, 0.0], [1.0, 2.0, 1.0]],
                   jnp.float32).reshape(1, 1, 3, 3)
    dn = lax.conv_dimension_numbers(x.shape, wv.shape, ("NCHW", "OIHW", "NCHW"))
    x1 = lax.conv_general_dilated(x, wv, (1, 1), ((1, 1), (1, 1)),
                                  dimension_numbers=dn)
    x2 = lax.conv_general_dilated(x, wh, (1, 1), ((1, 1), (1, 1)),
                                  dimension_numbers=dn)
    return jnp.sqrt(x1 * x1 + x2 * x2 + 1e-6)


if __name__ == "__main__":
    key = jax.random.PRNGKey(0)
    x = jax.random.normal(key, (2, 1, 16, 16), dtype=jnp.float32)

    out = jax.jit(sobel_net)(x)
    out = jax.block_until_ready(out)

    ref = _sobel_reference(x)
    assert out.shape == ref.shape == (2, 1, 16, 16)
    assert jnp.allclose(out, ref, atol=1e-5, rtol=1e-5)

    print("KERNEL_OK")
</pallas_src>

<mosaic_0001>
module attributes {stable_mosaic.version = 11 : i64} {
  func.func @_sobel_kernel(%arg0: i32, %arg1: memref<256x2xf32, #tpu.memory_space<vmem>>, %arg2: memref<256x2xf32, #tpu.memory_space<vmem>>) attributes {dimension_semantics = [#tpu.dimension_semantics<parallel>], iteration_bounds = array<i64: 1>, scalar_prefetch = 0 : i64, scratch_operands = 0 : i64, tpu.core_type = #tpu.core_type<tc>, window_params = [{transform_indices = @transform_0, window_bounds = array<i64: 256, 2>}, {transform_indices = @transform_1, window_bounds = array<i64: 256, 2>}]} {
    %c0 = arith.constant 0 : index
    %c0_0 = arith.constant 0 : index
    %0 = vector.load %arg1[%c0, %c0_0] : memref<256x2xf32, #tpu.memory_space<vmem>>, vector<256x2xf32>
    %1 = tpu.iota {dimensions = array<i32: 0>} : vector<256x2xi32>
    %c16_i32 = arith.constant 16 : i32
    %c0_i32 = arith.constant 0 : i32
    %2 = arith.cmpi eq, %c16_i32, %c0_i32 : i32
    %c1_i32 = arith.constant 1 : i32
    %3 = arith.select %2, %c1_i32, %c16_i32 : i32
    %4 = vector.broadcast %3 : i32 to vector<256x2xi32>
    %5 = arith.remsi %1, %4 : vector<256x2xi32>
    %c0_i32_1 = arith.constant 0 : i32
    %6 = vector.broadcast %c0_i32_1 : i32 to vector<256x2xi32>
    %7 = arith.cmpi ne, %5, %6 : vector<256x2xi32>
    %c0_i32_2 = arith.constant 0 : i32
    %8 = vector.broadcast %c0_i32_2 : i32 to vector<256x2xi32>
    %9 = arith.cmpi slt, %5, %8 : vector<256x2xi32>
    %c0_i32_3 = arith.constant 0 : i32
    %10 = arith.cmpi slt, %3, %c0_i32_3 : i32
    %11 = vector.broadcast %10 : i1 to vector<256x2xi1>
    %12 = vector.broadcast %11 : vector<256x2xi1> to vector<256x2xi1>
    %13 = arith.xori %9, %12 : vector<256x2xi1>
    %14 = arith.andi %13, %7 : vector<256x2xi1>
    %15 = vector.broadcast %3 : i32 to vector<256x2xi32>
    %16 = arith.addi %5, %15 : vector<256x2xi32>
    %17 = arith.select %14, %16, %5 : vector<256x2xi1>, vector<256x2xi32>
    %c15_i32 = arith.constant 15 : i32
    %18 = vector.broadcast %c15_i32 : i32 to vector<256x2xi32>
    %19 = arith.cmpi slt, %17, %18 : vector<256x2xi32>
    %c0_i32_4 = arith.constant 0 : i32
    %20 = vector.broadcast %c0_i32_4 : i32 to vector<256x2xi32>
    %21 = arith.cmpi sgt, %17, %20 : vector<256x2xi32>
    %c240_i32 = arith.constant 240 : i32
    %22 = vector.broadcast %c240_i32 : i32 to vector<256x2xi32>
    %23 = arith.cmpi slt, %1, %22 : vector<256x2xi32>
    %c16_i32_5 = arith.constant 16 : i32
    %24 = vector.broadcast %c16_i32_5 : i32 to vector<256x2xi32>
    %25 = arith.cmpi sge, %1, %24 : vector<256x2xi32>
    %c255_i32 = arith.constant 255 : i32
    %26 = tpu.dynamic_rotate %0 by %c255_i32 dim 0 : vector<256x2xf32>, i32 -> vector<256x2xf32>
    %cst = arith.constant 0.000000e+00 : f32
    %27 = vector.broadcast %cst : f32 to vector<256x2xf32>
    %28 = arith.select %19, %26, %27 : vector<256x2xi1>, vector<256x2xf32>
    %c1_i32_6 = arith.constant 1 : i32
    %29 = tpu.dynamic_rotate %0 by %c1_i32_6 dim 0 : vector<256x2xf32>, i32 -> vector<256x2xf32>
    %cst_7 = arith.constant 0.000000e+00 : f32
    %30 = vector.broadcast %cst_7 : f32 to vector<256x2xf32>
    %31 = arith.select %21, %29, %30 : vector<256x2xi1>, vector<256x2xf32>
    %32 = arith.subf %28, %31 : vector<256x2xf32>
    %cst_8 = arith.constant 2.000000e+00 : f32
    %33 = vector.broadcast %cst_8 : f32 to vector<256x2xf32>
    %34 = arith.mulf %33, %0 : vector<256x2xf32>
    %35 = arith.addf %31, %34 : vector<256x2xf32>
    %36 = arith.addf %35, %28 : vector<256x2xf32>
    %c16_i32_9 = arith.constant 16 : i32
    %37 = tpu.dynamic_rotate %32 by %c16_i32_9 dim 0 : vector<256x2xf32>, i32 -> vector<256x2xf32>
    %cst_10 = arith.constant 0.000000e+00 : f32
    %38 = vector.broadcast %cst_10 : f32 to vector<256x2xf32>
    %39 = arith.select %25, %37, %38 : vector<256x2xi1>, vector<256x2xf32>
    %cst_11 = arith.constant 2.000000e+00 : f32
    %40 = vector.broadcast %cst_11 : f32 to vector<256x2xf32>
    %41 = arith.mulf %40, %32 : vector<256x2xf32>
    %42 = arith.addf %39, %41 : vector<256x2xf32>
    %c240_i32_12 = arith.constant 240 : i32
    %43 = tpu.dynamic_rotate %32 by %c240_i32_12 dim 0 : vector<256x2xf32>, i32 -> vector<256x2xf32>
    %cst_13 = arith.constant 0.000000e+00 : f32
    %44 = vector.broadcast %cst_13 : f32 to vector<256x2xf32>
    %45 = arith.select %23, %43, %44 : vector<256x2xi1>, vector<256x2xf32>
    %46 = arith.addf %42, %45 : vector<256x2xf32>
    %c240_i32_14 = arith.constant 240 : i32
    %47 = tpu.dynamic_rotate %36 by %c240_i32_14 dim 0 : vector<256x2xf32>, i32 -> vector<256x2xf32>
    %cst_15 = arith.constant 0.000000e+00 : f32
    %48 = vector.broadcast %cst_15 : f32 to vector<256x2xf32>
    %49 = arith.select %23, %47, %48 : vector<256x2xi1>, vector<256x2xf32>
    %c16_i32_16 = arith.constant 16 : i32
    %50 = tpu.dynamic_rotate %36 by %c16_i32_16 dim 0 : vector<256x2xf32>, i32 -> vector<256x2xf32>
    %cst_17 = arith.constant 0.000000e+00 : f32
    %51 = vector.broadcast %cst_17 : f32 to vector<256x2xf32>
    %52 = arith.select %25, %50, %51 : vector<256x2xi1>, vector<256x2xf32>
    %53 = arith.subf %49, %52 : vector<256x2xf32>
    %54 = arith.mulf %46, %46 : vector<256x2xf32>
    %55 = arith.mulf %53, %53 : vector<256x2xf32>
    %56 = arith.addf %54, %55 : vector<256x2xf32>
    %cst_18 = arith.constant 9.99999997E-7 : f32
    %57 = vector.broadcast %cst_18 : f32 to vector<256x2xf32>
    %58 = arith.addf %56, %57 : vector<256x2xf32>
    %59 = math.sqrt %58 : vector<256x2xf32>
    %c0_19 = arith.constant 0 : index
    %c0_20 = arith.constant 0 : index
    %60 = vector.load %arg2[%c0_19, %c0_20] : memref<256x2xf32, #tpu.memory_space<vmem>>, vector<256x2xf32>
    tpu.vector_store %arg2[%c0_19, %c0_20], %59 {strides = array<i32>} : memref<256x2xf32, #tpu.memory_space<vmem>>, vector<256x2xf32>,
    return
  }
  func.func @transform_0(%arg0: i32) -> (i32, i32) {
    %c0_i32 = arith.constant 0 : i32
    %c0_i32_0 = arith.constant 0 : i32
    return %c0_i32, %arg0 : i32, i32
  }
  func.func @transform_1(%arg0: i32) -> (i32, i32) {
    %c0_i32 = arith.constant 0 : i32
    %c0_i32_0 = arith.constant 0 : i32
    return %c0_i32, %arg0 : i32, i32
  }
}

</mosaic_0001>

<bundles_post_ra>
// kernel: sobel_net.1
= control target key start
LH: loop header
LB: loop body
LE: loop exit
PB: predicated region body
PF: predicated region fallthrough
CT: control target
= control target key end

     0   :  { %v40_v0 = vlaneseq  ;;  %vm1515_vm8 = vcmask 15360   ;;  %s2757_s0 = inlined_call_operand.vmem [shape: f32[256,2], index: 0, kind: input, shape index: {}]   ;;  %s2758_s1 = inlined_call_operand.vmem [shape: f32[256,2], index: 1, kind: output, shape index: {}]  }
   0x1   :  { %v1630_v1 = vld [vmem:[%s2757_s0] sm:$0xff]  ;;  %v1635_v2 = vld [vmem:[%s2757_s0 + $0x8] sm:$0xff]  ;;  %v10_v3 = vld [vmem:[%s2757_s0 + $0x10] sm:$0xff] }
   0x2   :  { %v1643_v4 = vld [vmem:[%s2757_s0 + $0x18] sm:$0xff]  ;;  %v1650_v6 = vshrl.u32 %v40_v0, 7  ;;  %v585_v7 = vrot.slane %v1630_v1, 1  ;;  %v586_v8 = vrot.slane %v1635_v2, 1  ;;  %v587_v9 = vrot.slane %v10_v3, 1  ;;  %v1664_v17 = vld [vmem:[%s2757_s0 + $0x20] sm:$0xff] }
   0x3   :  { %v1648_v5 = vld [vmem:[%s2757_s0 + $0xf8] sm:$0xff]  ;;  %v588_v10 = vrot.slane %v1643_v4, 1  ;;  %v682_v11 = vrot.slane %v1630_v1, 7  ;;  %v683_v12 = vrot.slane %v1635_v2, 7  ;;  %v684_v13 = vrot.slane %v10_v3, 7  ;;  %v1697_v41 = vld [vmem:[%s2757_s0 + $0x28] sm:$0xff] }
   0x4   :  { %v43_v14 = vadd.s32 16, %v1650_v6  ;;  %v77_v15 = vand.u32 15, %v1650_v6  ;;  %vm617_vm0 = vcmp.lt.s32.totalorder %v1650_v6, 7  ;;  %v713_v16 = vrot.slane %v1648_v5, 7 }
   0x5   :  { %v646_v18 = vsel %vm617_vm0, %v587_v9, %v588_v10  ;;  %v648_v19 = vsel %vm617_vm0, %v585_v7, %v586_v8  ;;  %vm714_vm1 = vcmp.lt.s32.totalorder %v1650_v6, 1  ;;  %v813_v20 = vmul.f32 2.0, %v10_v3 }
   0x6   :  { %v91_v21 = vand.u32 15, %v43_v14  ;;  %vm489_vm2 = vcmp.gt.s32.totalorder %v77_v15, 0  ;;  %v744_v22 = vsel %vm714_vm1, %v683_v12, %v684_v13  ;;  %v746_v23 = vsel %vm714_vm1, %v713_v16, %v682_v11 }
   0x7   :  { %v747_v24 = vsel %vm489_vm2, %v746_v23, 0.0  ;;  %v42_v25 = vadd.s32 8, %v1650_v6  ;;  %v44_v26 = vadd.s32 24, %v1650_v6  ;;  %v589_v27 = vrot.slane %v1664_v17, 1 }
   0x8   :  { %vm491_vm3 = vcmp.gt.s32.totalorder %v91_v21, 0  ;;  %v779_v28 = vsub.f32 %v648_v19, %v747_v24  ;;  %v647_v29 = vsel %vm617_vm0, %v586_v8, %v587_v9  ;;  %v685_v30 = vrot.slane %v1643_v4, 7 }
   0x9   :  { %v749_v31 = vsel %vm491_vm3, %v744_v22, 0.0  ;;  %v84_v32 = vand.u32 15, %v42_v25  ;;  %v98_v33 = vand.u32 15, %v44_v26  ;;  %v645_v34 = vsel %vm617_vm0, %v588_v10, %v589_v27 }
   0xa   :  { %v1687_v35 = vsub.f32 %v646_v18, %v749_v31  ;;  %v845_v36 = vadd.f32 %v813_v20, %v749_v31  ;;  %v939_v37 = vmul.f32 2.0, %v779_v28  ;;  %v743_v38 = vsel %vm714_vm1, %v684_v13, %v685_v30  ;;  %v1727_v13 = vld [vmem:[%s2757_s0 + $0x30] sm:$0xff]  ;;  %v1754_v31 = vld [vmem:[%s2757_s0 + $0x38] sm:$0xff] }
   0xb   :  { %vm458_vm4 = vcmp.lt.s32.totalorder %v84_v32, 15  ;;  %vm460_vm5 = vcmp.lt.s32.totalorder %v98_v33, 15  ;;  %v745_v39 = vsel %vm714_vm1, %v682_v11, %v683_v12  ;;  %v814_v40 = vmul.f32 2.0, %v1643_v4 }
   0xc   :  { %v1699_v42 = vadd.f32 %v845_v36, %v646_v18  ;;  %v1035_v43 = vadd.f32 %v939_v37, %v1687_v35  ;;  %v651_v44 = vsel %vm458_vm4, %v647_v29, 0.0  ;;  %v653_v45 = vsel %vm460_vm5, %v645_v34, 0.0 }
   0xd   :  { %v780_v46 = vsub.f32 %v651_v44, %v745_v39  ;;  %v1702_v47 = vsub.f32 %v653_v45, %v743_v38  ;;  %v846_v48 = vadd.f32 %v814_v40, %v743_v38  ;;  %v45_v49 = vadd.s32 32, %v1650_v6 }
   0xe   :  { %v1163_v50 = vmul.f32 %v1035_v43, %v1035_v43  ;;  %v1195_v51 = vmul.f32 %v1699_v42, %v1699_v42  ;;  %v590_v52 = vrot.slane %v1697_v41, 1  ;;  %v686_v53 = vrot.slane %v1664_v17, 7 }
   0xf   :  { %v1709_v54 = vadd.f32 %v846_v48, %v653_v45  ;;  %v940_v55 = vmul.f32 2.0, %v780_v46  ;;  %v105_v56 = vand.u32 15, %v45_v49  ;;  %v811_v57 = vmul.f32 2.0, %v1630_v1 }
  0x10   :  { %v1227_v58 = vadd.f32 %v1195_v51, %v1163_v50  ;;  %v644_v59 = vsel %vm617_vm0, %v589_v27, %v590_v52  ;;  %v742_v60 = vsel %vm714_vm1, %v685_v30, %v686_v53  ;;  %v815_v61 = vmul.f32 2.0, %v1664_v17 }
  0x11   :  { %v1036_v62 = vadd.f32 %v940_v55, %v1702_v47  ;;  %v1196_v63 = vmul.f32 %v1709_v54, %v1709_v54  ;;  %vm493_vm6 = vcmp.gt.s32.totalorder %v105_v56, 0  ;;  %v843_v0 = vadd.f32 %v811_v57, %v747_v24 }
  0x12   :  { %v1720_v3 = vadd.f32 1e-06, %v1227_v58  ;;  %v751_v4 = vsel %vm493_vm6, %v742_v60, 0.0  ;;  %v941_v8 = vmul.f32 2.0, %v1687_v35  ;;  %v46_v9 = vadd.s32 40, %v1650_v6 }
  0x13   :  { %v1164_v10 = vmul.f32 %v1036_v62, %v1036_v62  ;;  %v847_v11 = vadd.f32 %v815_v61, %v751_v4  ;;  %v875_v12 = vadd.f32 %v843_v0, %v648_v19  ;;  %v1730_v14 = vsub.f32 %v644_v59, %v751_v4 }
  0x14   :  { %1552 = vrsqrt.f32 %v1720_v3  ;;  %v973_v18 = vadd.f32 %v941_v8, %v779_v28  ;;  %v112_v20 = vand.u32 15, %v46_v9  ;;  %v591_v21 = vrot.slane %v1727_v13, 1 }
  0x15   :  { %v1228_v15 = vadd.f32 %v1196_v63, %v1164_v10  ;;  %v1732_v17 = vadd.f32 %v847_v11, %v644_v59  ;;  %v687_v22 = vrot.slane %v1697_v41, 7  ;;  %v812_v19 = vmul.f32 2.0, %v1635_v2  ;;  %v1778_v59 = vld [vmem:[%s2757_s0 + $0x40] sm:$0xff] }
  0x16   :  { %v816_v23 = vmul.f32 2.0, %v1697_v41  ;;  %v1037_v25 = vadd.f32 %v973_v18, %v1730_v14  ;;  %vm462_vm7 = vcmp.lt.s32.totalorder %v112_v20, 15  ;;  %v643_v27 = vsel %vm617_vm0, %v590_v52, %v591_v21 }
  0x17   :  { %v1738_v24 = vadd.f32 1e-06, %v1228_v15  ;;  %v1133_v26 = vsub.f32 %v1732_v17, %v875_v12  ;;  %v741_v28 = vsel %vm714_vm1, %v686_v53, %v687_v22  ;;  %v844_v29 = vadd.f32 %v812_v19, %v745_v39 }
  0x18   :  { %v942_v30 = vmul.f32 2.0, %v1702_v47  ;;  %vm1293_vm9 = vcmp.eq.f32.partialorder %v1720_v3, inf  ;;  %vm1295_vm10 = vcmp.eq.f32.partialorder %v1720_v3, 0.0  ;;  %v1296_v2 = vand.u32 2147483648, %v1720_v3 }
  0x19   :  { %1554 = vrsqrt.f32 %v1738_v24  ;;  %v1165_v32 = vmul.f32 %v1037_v25, %v1037_v25  ;;  %v1197_v33 = vmul.f32 %v1133_v26, %v1133_v26  ;;  %v655_v34 = vsel %vm462_vm7, %v643_v27, 0.0 }
  0x1a   :  { %v848_v36 = vadd.f32 %v816_v23, %v741_v28  ;;  %v1756_v37 = vsub.f32 %v655_v34, %v741_v28  ;;  %v876_v38 = vadd.f32 %v844_v29, %v651_v44  ;;  %v974_v39 = vadd.f32 %v942_v30, %v780_v46  ;;  %v1818_v30 = vld [vmem:[%s2757_s0 + $0x48] sm:$0xff] }
  0x1b   :  { %v47_v40 = vadd.s32 48, %v1650_v6  ;;  %v1229_v41 = vadd.f32 %v1197_v33, %v1165_v32  ;;  %v592_v45 = vrot.slane %v1754_v31, 1  ;;  %v688_v48 = vrot.slane %v1727_v13, 7 }
  0x1c   :  { %v1759_v43 = vadd.f32 %v848_v36, %v655_v34  ;;  %vm1300_vm11 = vcmp.eq.f32.partialorder %v1738_v24, inf  ;;  %v1038_v49 = vadd.f32 %v974_v39, %v1756_v37  ;;  %v943_v51 = vmul.f32 2.0, %v1730_v14 }
  0x1d   :  { %v119_v50 = vand.u32 15, %v47_v40  ;;  %v1766_v53 = vadd.f32 1e-06, %v1229_v41  ;;  %v740_v46 = vsel %vm714_vm1, %v687_v22, %v688_v48  ;;  %v817_v55 = vmul.f32 2.0, %v1727_v13 }
  0x1e   :  { %v1553_v52 = vpop.eup %1552  ;;  %v1134_v44 = vsub.f32 %v1759_v43, %v876_v38  ;;  %v1166_v57 = vmul.f32 %v1038_v49, %v1038_v49  ;;  %v642_v58 = vsel %vm617_vm0, %v591_v21, %v592_v45  ;;  %vm1302_vm13 = vcmp.eq.f32.partialorder %v1738_v24, 0.0 }
  0x1f   :  { %v1292_v56 = vmul.f32 %v1553_v52, %v1720_v3  ;;  %vm495_vm12 = vcmp.gt.s32.totalorder %v119_v50, 0  ;;  %v1303_v60 = vand.u32 2147483648, %v1738_v24  ;;  %1556 = vrsqrt.f32 %v1766_v53 }
  0x20   :  { %v975_v61 = vadd.f32 %v943_v51, %v1687_v35  ;;  %v1198_v63 = vmul.f32 %v1134_v44, %v1134_v44  ;;  %v753_v0 = vsel %vm495_vm12, %v740_v46, 0.0  ;;  %v48_v4 = vadd.s32 56, %v1650_v6 }
  0x21   :  { %v1294_v62 = vsel %vm1293_vm9, %v1720_v3, %v1292_v56  ;;  %v1790_v9 = vsub.f32 %v642_v58, %v753_v0  ;;  %v849_v10 = vadd.f32 %v817_v55, %v753_v0  ;;  %v593_v11 = vrot.slane %v1778_v59, 1 }
  0x22   :  { %v1297_v8 = vsel %vm1295_vm10, %v1296_v2, %v1294_v62  ;;  %v1230_v35 = vadd.f32 %v1198_v63, %v1166_v57  ;;  %v126_v13 = vand.u32 15, %v48_v4  ;;  %v689_v15 = vrot.slane %v1754_v31, 7  ;;  %v1857_v57 = vld [vmem:[%s2757_s0 + $0x50] sm:$0xff] }
  0x23   :  { %v1555_v12 = vpop.eup %1554  ;;  %1516 = vst.msk [vmem:[%s2758_s1] sm:$0xff] %vm1515_vm8, %v1297_v8  ;;  %v818_v18 = vmul.f32 2.0, %v1754_v31  ;;  %v1800_v20 = vadd.f32 %v849_v10, %v642_v58  ;;  %v1039_v21 = vadd.f32 %v975_v61, %v1790_v9  ;;  %v641_v22 = vsel %vm617_vm0, %v592_v45, %v593_v11 }
  0x24   :  { %v1299_v3 = vmul.f32 %v1555_v12, %v1738_v24  ;;  %v1805_v19 = vadd.f32 1e-06, %v1230_v35  ;;  %vm464_vm14 = vcmp.lt.s32.totalorder %v126_v13, 15  ;;  %v739_v23 = vsel %vm714_vm1, %v688_v48, %v689_v15 }
  0x25   :  { %v944_v25 = vmul.f32 2.0, %v1756_v37  ;;  %v1135_v27 = vsub.f32 %v1800_v20, %v1699_v42  ;;  %v1167_v28 = vmul.f32 %v1039_v21, %v1039_v21  ;;  %v657_v29 = vsel %vm464_vm14, %v641_v22, 0.0 }
  0x26   :  { %v1301_v26 = vsel %vm1300_vm11, %v1738_v24, %v1299_v3  ;;  %vm1307_vm15 = vcmp.eq.f32.partialorder %v1766_v53, inf  ;;  %vm1309_vm2 = vcmp.eq.f32.partialorder %v1766_v53, 0.0  ;;  %1558 = vrsqrt.f32 %v1805_v19 }
  0x27   :  { %v1304_v2 = vsel %vm1302_vm13, %v1303_v60, %v1301_v26  ;;  %v1310_v42 = vand.u32 2147483648, %v1766_v53  ;;  %v1199_v31 = vmul.f32 %v1135_v27, %v1135_v27  ;;  %v1830_v32 = vsub.f32 %v657_v29, %v739_v23 }
  0x28   :  { %1517 = vst.msk [vmem:[%s2758_s1 + $0x8] sm:$0xff] %vm1515_vm8, %v1304_v2  ;;  %v850_v33 = vadd.f32 %v818_v18, %v739_v23  ;;  %v976_v24 = vadd.f32 %v944_v25, %v1702_v47  ;;  %v49_v34 = vadd.s32 64, %v1650_v6  ;;  %v594_v36 = vrot.slane %v1818_v30, 1 }
  0x29   :  { %v690_v38 = vrot.slane %v1778_v59, 7  ;;  %v1557_v39 = vpop.eup %1556  ;;  %vm1314_vm3 = vcmp.eq.f32.partialorder %v1805_v19, inf  ;;  %v1231_v40 = vadd.f32 %v1199_v31, %v1167_v28  ;;  %v945_v45 = vmul.f32 2.0, %v1790_v9 }
  0x2a   :  { %v1837_v41 = vadd.f32 %v850_v33, %v657_v29  ;;  %v1306_v48 = vmul.f32 %v1557_v39, %v1766_v53  ;;  %v1040_v49 = vadd.f32 %v976_v24, %v1830_v32  ;;  %v133_v50 = vand.u32 15, %v49_v34  ;;  %v1897_v29 = vld [vmem:[%s2757_s0 + $0x58] sm:$0xff] }
  0x2b   :  { %v819_v47 = vmul.f32 2.0, %v1778_v59  ;;  %v1843_v51 = vadd.f32 1e-06, %v1231_v40  ;;  %v640_v44 = vsel %vm617_vm0, %v593_v11, %v594_v36  ;;  %v738_v46 = vsel %vm714_vm1, %v689_v15, %v690_v38  ;;  %v1921_v40 = vld [vmem:[%s2757_s0 + $0x60] sm:$0xff] }
  0x2c   :  { %v1136_v52 = vsub.f32 %v1837_v41, %v1709_v54  ;;  %v1308_v55 = vsel %vm1307_vm15, %v1766_v53, %v1306_v48  ;;  %v1168_v56 = vmul.f32 %v1040_v49, %v1040_v49  ;;  %vm497_vm4 = vcmp.gt.s32.totalorder %v133_v50, 0 }
  0x2d   :  { %v50_v58 = vadd.s32 72, %v1650_v6  ;;  %v1311_v54 = vsel %vm1309_vm2, %v1310_v42, %v1308_v55  ;;  %vm1316_vm5 = vcmp.eq.f32.partialorder %v1805_v19, 0.0  ;;  %1560 = vrsqrt.f32 %v1843_v51 }
  0x2e   :  { %v977_v59 = vadd.f32 %v945_v45, %v1730_v14  ;;  %1518 = vst.msk [vmem:[%s2758_s1 + $0x10] sm:$0xff] %vm1515_vm8, %v1311_v54  ;;  %v1317_v60 = vand.u32 2147483648, %v1805_v19  ;;  %v1200_v61 = vmul.f32 %v1136_v52, %v1136_v52  ;;  %v755_v62 = vsel %vm497_vm4, %v738_v46, 0.0 }
  0x2f   :  { %v140_v63 = vand.u32 15, %v50_v58  ;;  %v1870_v0 = vsub.f32 %v640_v44, %v755_v62  ;;  %v851_v53 = vadd.f32 %v819_v47, %v755_v62  ;;  %v595_v4 = vrot.slane %v1857_v57, 1 }
  0x30   :  { %v691_v8 = vrot.slane %v1818_v30, 7  ;;  %v1559_v10 = vpop.eup %1558  ;;  %v1232_v11 = vadd.f32 %v1200_v61, %v1168_v56  ;;  %v820_v14 = vmul.f32 2.0, %v1818_v30  ;;  %v946_v12 = vmul.f32 2.0, %v1830_v32 }
  0x31   :  { %vm466_vm6 = vcmp.lt.s32.totalorder %v140_v63, 15  ;;  %v1313_v35 = vmul.f32 %v1559_v10, %v1805_v19  ;;  %v1877_v13 = vadd.f32 %v851_v53, %v640_v44  ;;  %v1041_v15 = vadd.f32 %v977_v59, %v1870_v0 }
  0x32   :  { %v639_v18 = vsel %vm617_vm0, %v594_v36, %v595_v4  ;;  %v1882_v3 = vadd.f32 1e-06, %v1232_v11  ;;  %v737_v22 = vsel %vm714_vm1, %v690_v38, %v691_v8  ;;  %v978_v23 = vadd.f32 %v946_v12, %v1756_v37 }
  0x33   :  { %v659_v21 = vsel %vm466_vm6, %v639_v18, 0.0  ;;  %v1315_v25 = vsel %vm1314_vm3, %v1805_v19, %v1313_v35  ;;  %v1137_v26 = vsub.f32 %v1877_v13, %v1732_v17  ;;  %v1169_v27 = vmul.f32 %v1041_v15, %v1041_v15 }
  0x34   :  { %v1892_v28 = vsub.f32 %v659_v21, %v737_v22  ;;  %v1318_v30 = vsel %vm1316_vm5, %v1317_v60, %v1315_v25  ;;  %vm1321_vm7 = vcmp.eq.f32.partialorder %v1843_v51, inf  ;;  %vm1323_vm9 = vcmp.eq.f32.partialorder %v1843_v51, 0.0 }
  0x35   :  { %1562 = vrsqrt.f32 %v1882_v3  ;;  %1519 = vst.msk [vmem:[%s2758_s1 + $0x18] sm:$0xff] %vm1515_vm8, %v1318_v30  ;;  %v1324_v17 = vand.u32 2147483648, %v1843_v51  ;;  %v1201_v37 = vmul.f32 %v1137_v26, %v1137_v26  ;;  %v852_v2 = vadd.f32 %v820_v14, %v737_v22 }
  0x36   :  { %v1042_v42 = vadd.f32 %v978_v23, %v1892_v28  ;;  %vm1328_vm10 = vcmp.eq.f32.partialorder %v1882_v3, inf  ;;  %v51_v19 = vadd.s32 80, %v1650_v6  ;;  %v596_v31 = vrot.slane %v1897_v29, 1 }
  0x37   :  { %v692_v33 = vrot.slane %v1857_v57, 7  ;;  %v1561_v24 = vpop.eup %1560  ;;  %v1233_v34 = vadd.f32 %v1201_v37, %v1169_v27  ;;  %v1914_v36 = vadd.f32 %v852_v2, %v659_v21  ;;  %v821_v38 = vmul.f32 2.0, %v1857_v57  ;;  %v1973_v27 = vld [vmem:[%s2757_s0 + $0x68] sm:$0xff] }
  0x38   :  { %v947_v39 = vmul.f32 2.0, %v1870_v0  ;;  %v1320_v45 = vmul.f32 %v1561_v24, %v1843_v51  ;;  %v1170_v48 = vmul.f32 %v1042_v42, %v1042_v42  ;;  %v147_v49 = vand.u32 15, %v51_v19 }
  0x39   :  { %v638_v50 = vsel %vm617_vm0, %v595_v4, %v596_v31  ;;  %v1926_v47 = vadd.f32 1e-06, %v1233_v34  ;;  %v1138_v52 = vsub.f32 %v1914_v36, %v1759_v43  ;;  %v736_v44 = vsel %vm714_vm1, %v691_v8, %v692_v33 }
  0x3a   :  { %v52_v46 = vadd.s32 88, %v1650_v6  ;;  %v1322_v55 = vsel %vm1321_vm7, %v1843_v51, %v1320_v45  ;;  %vm499_vm11 = vcmp.gt.s32.totalorder %v147_v49, 0  ;;  %v597_v56 = vrot.slane %v1921_v40, 1 }
  0x3b   :  { %v693_v57 = vrot.slane %v1897_v29, 7  ;;  %v1325_v58 = vsel %vm1323_vm9, %v1324_v17, %v1322_v55  ;;  %vm1330_vm12 = vcmp.eq.f32.partialorder %v1882_v3, 0.0  ;;  %1564 = vrsqrt.f32 %v1926_v47  ;;  %v2011_v55 = vld [vmem:[%s2757_s0 + $0x70] sm:$0xff] }
  0x3c   :  { %v979_v43 = vadd.f32 %v947_v39, %v1790_v9  ;;  %1520 = vst.msk [vmem:[%s2758_s1 + $0x20] sm:$0xff] %vm1515_vm8, %v1325_v58  ;;  %v1331_v54 = vand.u32 2147483648, %v1882_v3  ;;  %v1202_v59 = vmul.f32 %v1138_v52, %v1138_v52  ;;  %v757_v60 = vsel %vm499_vm11, %v736_v44, 0.0 }
  0x3d   :  { %v154_v61 = vand.u32 15, %v52_v46  ;;  %v1948_v62 = vsub.f32 %v638_v50, %v757_v60  ;;  %v853_v51 = vadd.f32 %v821_v38, %v757_v60  ;;  %v637_v63 = vsel %vm617_vm0, %v596_v31, %v597_v56 }
  0x3e   :  { %v735_v53 = vsel %vm714_vm1, %v692_v33, %v693_v57  ;;  %v1234_v4 = vadd.f32 %v1202_v59, %v1170_v48  ;;  %v822_v8 = vmul.f32 2.0, %v1897_v29  ;;  %v948_v10 = vmul.f32 2.0, %v1892_v28 }
  0x3f   :  { %v1563_v9 = vpop.eup %1562  ;;  %vm468_vm13 = vcmp.lt.s32.totalorder %v154_v61, 15  ;;  %v1957_v14 = vadd.f32 %v853_v51, %v638_v50  ;;  %v1043_v12 = vadd.f32 %v979_v43, %v1948_v62  ;;  %v53_v29 = vadd.s32 96, %v1650_v6 }
  0x40   :  { %v1327_v11 = vmul.f32 %v1563_v9, %v1882_v3  ;;  %v661_v35 = vsel %vm468_vm13, %v637_v63, 0.0  ;;  %v1960_v15 = vadd.f32 1e-06, %v1234_v4  ;;  %v854_v21 = vadd.f32 %v822_v8, %v735_v53 }
  0x41   :  { %v1962_v18 = vsub.f32 %v661_v35, %v735_v53  ;;  %v980_v22 = vadd.f32 %v948_v10, %v1830_v32  ;;  %v1139_v25 = vsub.f32 %v1957_v14, %v1800_v20  ;;  %v1171_v26 = vmul.f32 %v1043_v12, %v1043_v12 }
  0x42   :  { %v1329_v23 = vsel %vm1328_vm10, %v1882_v3, %v1327_v11  ;;  %vm1335_vm14 = vcmp.eq.f32.partialorder %v1926_v47, inf  ;;  %vm1337_vm15 = vcmp.eq.f32.partialorder %v1926_v47, 0.0  ;;  %1566 = vrsqrt.f32 %v1960_v15 }
  0x43   :  { %v1332_v30 = vsel %vm1330_vm12, %v1331_v54, %v1329_v23  ;;  %v1338_v20 = vand.u32 2147483648, %v1926_v47  ;;  %v1203_v32 = vmul.f32 %v1139_v25, %v1139_v25  ;;  %v1986_v17 = vadd.f32 %v854_v21, %v661_v35 }
  0x44   :  { %1521 = vst.msk [vmem:[%s2758_s1 + $0x28] sm:$0xff] %vm1515_vm8, %v1332_v30  ;;  %v1044_v37 = vadd.f32 %v980_v22, %v1962_v18  ;;  %v161_v3 = vand.u32 15, %v53_v29  ;;  %v598_v2 = vrot.slane %v1973_v27, 1  ;;  %v694_v42 = vrot.slane %v1921_v40, 7 }
  0x45   :  { %v823_v19 = vmul.f32 2.0, %v1921_v40  ;;  %v1565_v31 = vpop.eup %1564  ;;  %v1235_v33 = vadd.f32 %v1203_v32, %v1171_v26  ;;  %v1140_v24 = vsub.f32 %v1986_v17, %v1837_v41  ;;  %v949_v38 = vmul.f32 2.0, %v1948_v62 }
  0x46   :  { %v1172_v34 = vmul.f32 %v1044_v37, %v1044_v37  ;;  %v1334_v39 = vmul.f32 %v1565_v31, %v1926_v47  ;;  %vm501_vm2 = vcmp.gt.s32.totalorder %v161_v3, 0  ;;  %v636_v45 = vsel %vm617_vm0, %v597_v56, %v598_v2 }
  0x47   :  { %v734_v48 = vsel %vm714_vm1, %v693_v57, %v694_v42  ;;  %v2000_v49 = vadd.f32 1e-06, %v1235_v33  ;;  %v1204_v40 = vmul.f32 %v1140_v24, %v1140_v24  ;;  %v981_v52 = vadd.f32 %v949_v38, %v1870_v0 }
  0x48   :  { %v759_v50 = vsel %vm501_vm2, %v734_v48, 0.0  ;;  %v1336_v41 = vsel %vm1335_vm14, %v1926_v47, %v1334_v39  ;;  %v54_v56 = vadd.s32 104, %v1650_v6  ;;  %vm1342_vm3 = vcmp.eq.f32.partialorder %v1960_v15, inf  ;;  %v2082_v39 = vld [vmem:[%s2757_s0 + $0x80] sm:$0xff] }
  0x49   :  { %v2006_v44 = vsub.f32 %v636_v45, %v759_v50  ;;  %v855_v46 = vadd.f32 %v823_v19, %v759_v50  ;;  %v1339_v57 = vsel %vm1337_vm15, %v1338_v20, %v1336_v41  ;;  %vm1344_vm4 = vcmp.eq.f32.partialorder %v1960_v15, 0.0 }
  0x4a   :  { %1568 = vrsqrt.f32 %v2000_v49  ;;  %1522 = vst.msk [vmem:[%s2758_s1 + $0x30] sm:$0xff] %vm1515_vm8, %v1339_v57  ;;  %v1345_v0 = vand.u32 2147483648, %v1960_v15  ;;  %v1236_v58 = vadd.f32 %v1204_v40, %v1172_v34  ;;  %v168_v47 = vand.u32 15, %v54_v56 }
  0x4b   :  { %v2024_v43 = vadd.f32 %v855_v46, %v636_v45  ;;  %v1045_v54 = vadd.f32 %v981_v52, %v2006_v44  ;;  %v599_v59 = vrot.slane %v2011_v55, 1  ;;  %v695_v60 = vrot.slane %v1973_v27, 7 }
  0x4c   :  { %v824_v61 = vmul.f32 2.0, %v1973_v27  ;;  %v1567_v51 = vpop.eup %1566  ;;  %v2030_v63 = vadd.f32 1e-06, %v1236_v58  ;;  %v950_v4 = vmul.f32 2.0, %v1962_v18  ;;  %vm470_vm5 = vcmp.lt.s32.totalorder %v168_v47, 15 }
  0x4d   :  { %v1141_v53 = vsub.f32 %v2024_v43, %v1877_v13  ;;  %v1173_v9 = vmul.f32 %v1045_v54, %v1045_v54  ;;  %v1341_v8 = vmul.f32 %v1567_v51, %v1960_v15  ;;  %v635_v10 = vsel %vm617_vm0, %v598_v2, %v599_v59  ;;  %v2047_v13 = vld [vmem:[%s2757_s0 + $0x78] sm:$0xff] }
  0x4e   :  { %v733_v11 = vsel %vm714_vm1, %v694_v42, %v695_v60  ;;  %vm1349_vm6 = vcmp.eq.f32.partialorder %v2000_v49, inf  ;;  %vm1351_vm7 = vcmp.eq.f32.partialorder %v2000_v49, 0.0  ;;  %v1352_v12 = vand.u32 2147483648, %v2000_v49 }
  0x4f   :  { %1570 = vrsqrt.f32 %v2030_v63  ;;  %v1343_v35 = vsel %vm1342_vm3, %v1960_v15, %v1341_v8  ;;  %v1205_v21 = vmul.f32 %v1141_v53, %v1141_v53  ;;  %v663_v22 = vsel %vm470_vm5, %v635_v10, 0.0 }
  0x50   :  { %v856_v23 = vadd.f32 %v824_v61, %v733_v11  ;;  %v1346_v25 = vsel %vm1344_vm4, %v1345_v0, %v1343_v35  ;;  %v2054_v26 = vsub.f32 %v663_v22, %v733_v11  ;;  %v982_v27 = vadd.f32 %v950_v4, %v1892_v28  ;;  %v2122_v11 = vld [vmem:[%s2757_s0 + $0x88] sm:$0xff] }
  0x51   :  { %v55_v29 = vadd.s32 112, %v1650_v6  ;;  %1523 = vst.msk [vmem:[%s2758_s1 + $0x38] sm:$0xff] %vm1515_vm8, %v1346_v25  ;;  %v1237_v30 = vadd.f32 %v1205_v21, %v1173_v9  ;;  %v600_v32 = vrot.slane %v2047_v13, 1  ;;  %v696_v37 = vrot.slane %v2011_v55, 7 }
  0x52   :  { %v2062_v20 = vadd.f32 %v856_v23, %v663_v22  ;;  %vm1356_vm9 = vcmp.eq.f32.partialorder %v2030_v63, inf  ;;  %v1046_v15 = vadd.f32 %v982_v27, %v2054_v26  ;;  %v951_v28 = vmul.f32 2.0, %v2006_v44 }
  0x53   :  { %v175_v3 = vand.u32 15, %v55_v29  ;;  %v2069_v42 = vadd.f32 1e-06, %v1237_v30  ;;  %v732_v31 = vsel %vm714_vm1, %v695_v60, %v696_v37  ;;  %v825_v33 = vmul.f32 2.0, %v2011_v55 }
  0x54   :  { %v1569_v2 = vpop.eup %1568  ;;  %v1142_v19 = vsub.f32 %v2062_v20, %v1914_v36  ;;  %v1174_v34 = vmul.f32 %v1046_v15, %v1046_v15  ;;  %v634_v38 = vsel %vm617_vm0, %v599_v59, %v600_v32  ;;  %vm1358_vm11 = vcmp.eq.f32.partialorder %v2030_v63, 0.0 }
  0x55   :  { %v1348_v24 = vmul.f32 %v1569_v2, %v2000_v49  ;;  %vm503_vm10 = vcmp.gt.s32.totalorder %v175_v3, 0  ;;  %v1359_v36 = vand.u32 2147483648, %v2030_v63  ;;  %1572 = vrsqrt.f32 %v2069_v42 }
  0x56   :  { %v983_v45 = vadd.f32 %v951_v28, %v1948_v62  ;;  %v1206_v40 = vmul.f32 %v1142_v19, %v1142_v19  ;;  %v761_v50 = vsel %vm503_vm10, %v732_v31, 0.0  ;;  %v56_v52 = vadd.s32 120, %v1650_v6 }
  0x57   :  { %v1350_v48 = vsel %vm1349_vm6, %v2000_v49, %v1348_v24  ;;  %v2094_v46 = vsub.f32 %v634_v38, %v761_v50  ;;  %v857_v55 = vadd.f32 %v825_v33, %v761_v50  ;;  %v601_v56 = vrot.slane %v2082_v39, 1 }
  0x58   :  { %v1353_v41 = vsel %vm1351_vm7, %v1352_v12, %v1350_v48  ;;  %v1238_v62 = vadd.f32 %v1206_v40, %v1174_v34  ;;  %v182_v0 = vand.u32 15, %v56_v52  ;;  %v697_v58 = vrot.slane %v2047_v13, 7  ;;  %v2161_v34 = vld [vmem:[%s2757_s0 + $0x90] sm:$0xff] }
  0x59   :  { %v1571_v57 = vpop.eup %1570  ;;  %1524 = vst.msk [vmem:[%s2758_s1 + $0x40] sm:$0xff] %vm1515_vm8, %v1353_v41  ;;  %v826_v54 = vmul.f32 2.0, %v2047_v13  ;;  %v2104_v47 = vadd.f32 %v857_v55, %v634_v38  ;;  %v1047_v59 = vadd.f32 %v983_v45, %v2094_v46  ;;  %v633_v60 = vsel %vm617_vm0, %v600_v32, %v601_v56 }
  0x5a   :  { %v1355_v49 = vmul.f32 %v1571_v57, %v2030_v63  ;;  %v2109_v61 = vadd.f32 1e-06, %v1238_v62  ;;  %vm472_vm12 = vcmp.lt.s32.totalorder %v182_v0, 15  ;;  %v731_v51 = vsel %vm714_vm1, %v696_v37, %v697_v58 }
  0x5b   :  { %v952_v53 = vmul.f32 2.0, %v2054_v26  ;;  %v1143_v4 = vsub.f32 %v2104_v47, %v1957_v14  ;;  %v1175_v8 = vmul.f32 %v1047_v59, %v1047_v59  ;;  %v665_v10 = vsel %vm472_vm12, %v633_v60, 0.0 }
  0x5c   :  { %v1357_v9 = vsel %vm1356_vm9, %v2030_v63, %v1355_v49  ;;  %vm1363_vm13 = vcmp.eq.f32.partialorder %v2069_v42, inf  ;;  %vm1365_vm14 = vcmp.eq.f32.partialorder %v2069_v42, 0.0  ;;  %1574 = vrsqrt.f32 %v2109_v61 }
  0x5d   :  { %v1360_v12 = vsel %vm1358_vm11, %v1359_v36, %v1357_v9  ;;  %v1366_v14 = vand.u32 2147483648, %v2069_v42  ;;  %v1207_v13 = vmul.f32 %v1143_v4, %v1143_v4  ;;  %v2134_v35 = vsub.f32 %v665_v10, %v731_v51 }
  0x5e   :  { %1525 = vst.msk [vmem:[%s2758_s1 + $0x48] sm:$0xff] %vm1515_vm8, %v1360_v12  ;;  %v858_v21 = vadd.f32 %v826_v54, %v731_v51  ;;  %v984_v63 = vadd.f32 %v952_v53, %v1962_v18  ;;  %v57_v22 = vadd.s32 128, %v1650_v6  ;;  %v602_v23 = vrot.slane %v2122_v11, 1 }
  0x5f   :  { %v698_v25 = vrot.slane %v2082_v39, 7  ;;  %v1573_v27 = vpop.eup %1572  ;;  %vm1370_vm15 = vcmp.eq.f32.partialorder %v2109_v61, inf  ;;  %v1239_v29 = vadd.f32 %v1207_v13, %v1175_v8  ;;  %v953_v32 = vmul.f32 2.0, %v2094_v46 }
  0x60   :  { %v2141_v30 = vadd.f32 %v858_v21, %v665_v10  ;;  %v1362_v37 = vmul.f32 %v1573_v27, %v2069_v42  ;;  %v1048_v15 = vadd.f32 %v984_v63, %v2134_v35  ;;  %v189_v3 = vand.u32 15, %v57_v22  ;;  %v2201_v10 = vld [vmem:[%s2757_s0 + $0x98] sm:$0xff] }
  0x61   :  { %v827_v18 = vmul.f32 2.0, %v2082_v39  ;;  %v2147_v28 = vadd.f32 1e-06, %v1239_v29  ;;  %v632_v19 = vsel %vm617_vm0, %v601_v56, %v602_v23  ;;  %v730_v31 = vsel %vm714_vm1, %v697_v58, %v698_v25  ;;  %v2225_v29 = vld [vmem:[%s2757_s0 + $0xa0] sm:$0xff] }
  0x62   :  { %v1144_v2 = vsub.f32 %v2141_v30, %v1986_v17  ;;  %v1364_v33 = vsel %vm1363_vm13, %v2069_v42, %v1362_v37  ;;  %v1176_v24 = vmul.f32 %v1048_v15, %v1048_v15  ;;  %vm505_vm2 = vcmp.gt.s32.totalorder %v189_v3, 0 }
  0x63   :  { %v58_v38 = vadd.s32 136, %v1650_v6  ;;  %v1367_v17 = vsel %vm1365_vm14, %v1366_v14, %v1364_v33  ;;  %vm1372_vm3 = vcmp.eq.f32.partialorder %v2109_v61, 0.0  ;;  %1576 = vrsqrt.f32 %v2147_v28 }
  0x64   :  { %v985_v39 = vadd.f32 %v953_v32, %v2006_v44  ;;  %1526 = vst.msk [vmem:[%s2758_s1 + $0x50] sm:$0xff] %vm1515_vm8, %v1367_v17  ;;  %v1373_v36 = vand.u32 2147483648, %v2109_v61  ;;  %v1208_v45 = vmul.f32 %v1144_v2, %v1144_v2  ;;  %v763_v48 = vsel %vm505_vm2, %v730_v31, 0.0 }
  0x65   :  { %v196_v40 = vand.u32 15, %v58_v38  ;;  %v2174_v50 = vsub.f32 %v632_v19, %v763_v48  ;;  %v859_v42 = vadd.f32 %v827_v18, %v763_v48  ;;  %v603_v52 = vrot.slane %v2161_v34, 1 }
  0x66   :  { %v699_v41 = vrot.slane %v2122_v11, 7  ;;  %v1575_v55 = vpop.eup %1574  ;;  %v1240_v56 = vadd.f32 %v1208_v45, %v1176_v24  ;;  %v828_v44 = vmul.f32 2.0, %v2122_v11  ;;  %v954_v57 = vmul.f32 2.0, %v2134_v35 }
  0x67   :  { %vm474_vm4 = vcmp.lt.s32.totalorder %v196_v40, 15  ;;  %v1369_v62 = vmul.f32 %v1575_v55, %v2109_v61  ;;  %v2181_v0 = vadd.f32 %v859_v42, %v632_v19  ;;  %v1049_v58 = vadd.f32 %v985_v39, %v2174_v50 }
  0x68   :  { %v631_v54 = vsel %vm617_vm0, %v602_v23, %v603_v52  ;;  %v2186_v49 = vadd.f32 1e-06, %v1240_v56  ;;  %v729_v60 = vsel %vm714_vm1, %v698_v25, %v699_v41  ;;  %v986_v51 = vadd.f32 %v954_v57, %v2054_v26 }
  0x69   :  { %v667_v59 = vsel %vm474_vm4, %v631_v54, 0.0  ;;  %v1371_v53 = vsel %vm1370_vm15, %v2109_v61, %v1369_v62  ;;  %v1145_v9 = vsub.f32 %v2181_v0, %v2024_v43  ;;  %v1177_v4 = vmul.f32 %v1049_v58, %v1049_v58 }
  0x6a   :  { %v2196_v8 = vsub.f32 %v667_v59, %v729_v60  ;;  %v1374_v11 = vsel %vm1372_vm3, %v1373_v36, %v1371_v53  ;;  %vm1377_vm5 = vcmp.eq.f32.partialorder %v2147_v28, inf  ;;  %vm1379_vm6 = vcmp.eq.f32.partialorder %v2147_v28, 0.0 }
  0x6b   :  { %1578 = vrsqrt.f32 %v2186_v49  ;;  %1527 = vst.msk [vmem:[%s2758_s1 + $0x58] sm:$0xff] %vm1515_vm8, %v1374_v11  ;;  %v1380_v43 = vand.u32 2147483648, %v2147_v28  ;;  %v1209_v26 = vmul.f32 %v1145_v9, %v1145_v9  ;;  %v860_v12 = vadd.f32 %v828_v44, %v729_v60 }
  0x6c   :  { %v1050_v14 = vadd.f32 %v986_v51, %v2196_v8  ;;  %vm1384_vm7 = vcmp.eq.f32.partialorder %v2186_v49, inf  ;;  %v59_v61 = vadd.s32 144, %v1650_v6  ;;  %v604_v13 = vrot.slane %v2201_v10, 1 }
  0x6d   :  { %v700_v21 = vrot.slane %v2161_v34, 7  ;;  %v1577_v63 = vpop.eup %1576  ;;  %v1241_v22 = vadd.f32 %v1209_v26, %v1177_v4  ;;  %v2218_v23 = vadd.f32 %v860_v12, %v667_v59  ;;  %v829_v25 = vmul.f32 2.0, %v2161_v34  ;;  %v2277_v4 = vld [vmem:[%s2757_s0 + $0xa8] sm:$0xff] }
  0x6e   :  { %v955_v27 = vmul.f32 2.0, %v2174_v50  ;;  %v1376_v32 = vmul.f32 %v1577_v63, %v2147_v28  ;;  %v1178_v37 = vmul.f32 %v1050_v14, %v1050_v14  ;;  %v203_v15 = vand.u32 15, %v59_v61 }
  0x6f   :  { %v630_v3 = vsel %vm617_vm0, %v603_v52, %v604_v13  ;;  %v2230_v18 = vadd.f32 1e-06, %v1241_v22  ;;  %v1146_v2 = vsub.f32 %v2218_v23, %v2062_v20  ;;  %v728_v19 = vsel %vm714_vm1, %v699_v41, %v700_v21 }
  0x70   :  { %v60_v31 = vadd.s32 152, %v1650_v6  ;;  %v1378_v33 = vsel %vm1377_vm5, %v2147_v28, %v1376_v32  ;;  %vm507_vm9 = vcmp.gt.s32.totalorder %v203_v15, 0  ;;  %v605_v24 = vrot.slane %v2225_v29, 1 }
  0x71   :  { %v701_v34 = vrot.slane %v2201_v10, 7  ;;  %v1381_v38 = vsel %vm1379_vm6, %v1380_v43, %v1378_v33  ;;  %vm1386_vm10 = vcmp.eq.f32.partialorder %v2186_v49, 0.0  ;;  %1580 = vrsqrt.f32 %v2230_v18  ;;  %v2315_v33 = vld [vmem:[%s2757_s0 + $0xb0] sm:$0xff] }
  0x72   :  { %v987_v20 = vadd.f32 %v955_v27, %v2094_v46  ;;  %1528 = vst.msk [vmem:[%s2758_s1 + $0x60] sm:$0xff] %vm1515_vm8, %v1381_v38  ;;  %v1387_v17 = vand.u32 2147483648, %v2186_v49  ;;  %v1210_v39 = vmul.f32 %v1146_v2, %v1146_v2  ;;  %v765_v36 = vsel %vm507_vm9, %v728_v19, 0.0 }
  0x73   :  { %v210_v45 = vand.u32 15, %v60_v31  ;;  %v2252_v48 = vsub.f32 %v630_v3, %v765_v36  ;;  %v861_v28 = vadd.f32 %v829_v25, %v765_v36  ;;  %v629_v40 = vsel %vm617_vm0, %v604_v13, %v605_v24 }
  0x74   :  { %v727_v42 = vsel %vm714_vm1, %v700_v21, %v701_v34  ;;  %v1242_v52 = vadd.f32 %v1210_v39, %v1178_v37  ;;  %v830_v41 = vmul.f32 2.0, %v2201_v10  ;;  %v956_v55 = vmul.f32 2.0, %v2196_v8 }
  0x75   :  { %v1579_v46 = vpop.eup %1578  ;;  %vm476_vm11 = vcmp.lt.s32.totalorder %v210_v45, 15  ;;  %v2261_v44 = vadd.f32 %v861_v28, %v630_v3  ;;  %v1051_v57 = vadd.f32 %v987_v20, %v2252_v48  ;;  %v61_v10 = vadd.s32 160, %v1650_v6 }
  0x76   :  { %v1383_v56 = vmul.f32 %v1579_v46, %v2186_v49  ;;  %v669_v62 = vsel %vm476_vm11, %v629_v40, 0.0  ;;  %v2264_v58 = vadd.f32 1e-06, %v1242_v52  ;;  %v862_v59 = vadd.f32 %v830_v41, %v727_v42 }
  0x77   :  { %v2266_v54 = vsub.f32 %v669_v62, %v727_v42  ;;  %v988_v60 = vadd.f32 %v956_v55, %v2134_v35  ;;  %v1147_v53 = vsub.f32 %v2261_v44, %v2104_v47  ;;  %v1179_v9 = vmul.f32 %v1051_v57, %v1051_v57 }
  0x78   :  { %v1385_v51 = vsel %vm1384_vm7, %v2186_v49, %v1383_v56  ;;  %vm1391_vm12 = vcmp.eq.f32.partialorder %v2230_v18, inf  ;;  %vm1393_vm13 = vcmp.eq.f32.partialorder %v2230_v18, 0.0  ;;  %1582 = vrsqrt.f32 %v2264_v58 }
  0x79   :  { %v1388_v11 = vsel %vm1386_vm10, %v1387_v17, %v1385_v51  ;;  %v1394_v47 = vand.u32 2147483648, %v2230_v18  ;;  %v1211_v35 = vmul.f32 %v1147_v53, %v1147_v53  ;;  %v2290_v43 = vadd.f32 %v862_v59, %v669_v62 }
  0x7a   :  { %1529 = vst.msk [vmem:[%s2758_s1 + $0x68] sm:$0xff] %vm1515_vm8, %v1388_v11  ;;  %v1052_v26 = vadd.f32 %v988_v60, %v2266_v54  ;;  %v217_v49 = vand.u32 15, %v61_v10  ;;  %v606_v12 = vrot.slane %v2277_v4, 1  ;;  %v702_v14 = vrot.slane %v2225_v29, 7 }
  0x7b   :  { %v831_v61 = vmul.f32 2.0, %v2225_v29  ;;  %v1581_v13 = vpop.eup %1580  ;;  %v1243_v21 = vadd.f32 %v1211_v35, %v1179_v9  ;;  %v1148_v63 = vsub.f32 %v2290_v43, %v2141_v30  ;;  %v957_v25 = vmul.f32 2.0, %v2252_v48 }
  0x7c   :  { %v1180_v22 = vmul.f32 %v1052_v26, %v1052_v26  ;;  %v1390_v27 = vmul.f32 %v1581_v13, %v2230_v18  ;;  %vm509_vm14 = vcmp.gt.s32.totalorder %v217_v49, 0  ;;  %v628_v32 = vsel %vm617_vm0, %v605_v24, %v606_v12 }
  0x7d   :  { %v726_v37 = vsel %vm714_vm1, %v701_v34, %v702_v14  ;;  %v2304_v15 = vadd.f32 1e-06, %v1243_v21  ;;  %v1212_v29 = vmul.f32 %v1148_v63, %v1148_v63  ;;  %v989_v2 = vadd.f32 %v957_v25, %v2174_v50 }
  0x7e   :  { %v767_v3 = vsel %vm509_vm14, %v726_v37, 0.0  ;;  %v1392_v30 = vsel %vm1391_vm12, %v2230_v18, %v1390_v27  ;;  %v62_v24 = vadd.s32 168, %v1650_v6  ;;  %vm1398_vm15 = vcmp.eq.f32.partialorder %v2264_v58, inf  ;;  %v2386_v27 = vld [vmem:[%s2757_s0 + $0xc0] sm:$0xff] }
  0x7f   :  { %v2310_v19 = vsub.f32 %v628_v32, %v767_v3  ;;  %v863_v31 = vadd.f32 %v831_v61, %v767_v3  ;;  %v1395_v34 = vsel %vm1393_vm13, %v1394_v47, %v1392_v30  ;;  %vm1400_vm2 = vcmp.eq.f32.partialorder %v2264_v58, 0.0 }
  0x80   :  { %1584 = vrsqrt.f32 %v2304_v15  ;;  %1530 = vst.msk [vmem:[%s2758_s1 + $0x70] sm:$0xff] %vm1515_vm8, %v1395_v34  ;;  %v1401_v50 = vand.u32 2147483648, %v2264_v58  ;;  %v1244_v38 = vadd.f32 %v1212_v29, %v1180_v22  ;;  %v224_v18 = vand.u32 15, %v62_v24 }
  0x81   :  { %v2328_v20 = vadd.f32 %v863_v31, %v628_v32  ;;  %v1053_v17 = vadd.f32 %v989_v2, %v2310_v19  ;;  %v607_v39 = vrot.slane %v2315_v33, 1  ;;  %v703_v36 = vrot.slane %v2277_v4, 7 }
  0x82   :  { %v832_v45 = vmul.f32 2.0, %v2277_v4  ;;  %v1583_v28 = vpop.eup %1582  ;;  %v2334_v40 = vadd.f32 1e-06, %v1244_v38  ;;  %v958_v52 = vmul.f32 2.0, %v2266_v54  ;;  %vm478_vm3 = vcmp.lt.s32.totalorder %v224_v18, 15 }
  0x83   :  { %v1149_v42 = vsub.f32 %v2328_v20, %v2181_v0  ;;  %v1181_v46 = vmul.f32 %v1053_v17, %v1053_v17  ;;  %v1397_v41 = vmul.f32 %v1583_v28, %v2264_v58  ;;  %v627_v55 = vsel %vm617_vm0, %v606_v12, %v607_v39  ;;  %v2351_v0 = vld [vmem:[%s2757_s0 + $0xb8] sm:$0xff] }
  0x84   :  { %v725_v56 = vsel %vm714_vm1, %v702_v14, %v703_v36  ;;  %vm1405_vm4 = vcmp.eq.f32.partialorder %v2304_v15, inf  ;;  %vm1407_vm5 = vcmp.eq.f32.partialorder %v2304_v15, 0.0  ;;  %v1408_v57 = vand.u32 2147483648, %v2304_v15 }
  0x85   :  { %1586 = vrsqrt.f32 %v2334_v40  ;;  %v1399_v62 = vsel %vm1398_vm15, %v2264_v58, %v1397_v41  ;;  %v1213_v59 = vmul.f32 %v1149_v42, %v1149_v42  ;;  %v671_v60 = vsel %vm478_vm3, %v627_v55, 0.0 }
  0x86   :  { %v864_v51 = vadd.f32 %v832_v45, %v725_v56  ;;  %v1402_v53 = vsel %vm1400_vm2, %v1401_v50, %v1399_v62  ;;  %v2358_v9 = vsub.f32 %v671_v60, %v725_v56  ;;  %v990_v4 = vadd.f32 %v958_v52, %v2196_v8  ;;  %v2426_v56 = vld [vmem:[%s2757_s0 + $0xc8] sm:$0xff] }
  0x87   :  { %v63_v10 = vadd.s32 176, %v1650_v6  ;;  %1531 = vst.msk [vmem:[%s2758_s1 + $0x78] sm:$0xff] %vm1515_vm8, %v1402_v53  ;;  %v1245_v11 = vadd.f32 %v1213_v59, %v1181_v46  ;;  %v608_v35 = vrot.slane %v2351_v0, 1  ;;  %v704_v26 = vrot.slane %v2315_v33, 7 }
  0x88   :  { %v2366_v47 = vadd.f32 %v864_v51, %v671_v60  ;;  %vm1412_vm6 = vcmp.eq.f32.partialorder %v2334_v40, inf  ;;  %v1054_v58 = vadd.f32 %v990_v4, %v2358_v9  ;;  %v959_v8 = vmul.f32 2.0, %v2310_v19 }
  0x89   :  { %v231_v49 = vand.u32 15, %v63_v10  ;;  %v2373_v14 = vadd.f32 1e-06, %v1245_v11  ;;  %v724_v13 = vsel %vm714_vm1, %v703_v36, %v704_v26  ;;  %v833_v21 = vmul.f32 2.0, %v2315_v33 }
  0x8a   :  { %v1585_v12 = vpop.eup %1584  ;;  %v1150_v61 = vsub.f32 %v2366_v47, %v2218_v23  ;;  %v1182_v22 = vmul.f32 %v1054_v58, %v1054_v58  ;;  %v626_v25 = vsel %vm617_vm0, %v607_v39, %v608_v35  ;;  %vm1414_vm9 = vcmp.eq.f32.partialorder %v2334_v40, 0.0 }
  0x8b   :  { %v1404_v63 = vmul.f32 %v1585_v12, %v2304_v15  ;;  %vm511_vm7 = vcmp.gt.s32.totalorder %v231_v49, 0  ;;  %v1415_v23 = vand.u32 2147483648, %v2334_v40  ;;  %1588 = vrsqrt.f32 %v2373_v14 }
  0x8c   :  { %v991_v32 = vadd.f32 %v959_v8, %v2252_v48  ;;  %v1214_v29 = vmul.f32 %v1150_v61, %v1150_v61  ;;  %v769_v3 = vsel %vm511_vm7, %v724_v13, 0.0  ;;  %v64_v2 = vadd.s32 184, %v1650_v6 }
  0x8d   :  { %v1406_v37 = vsel %vm1405_vm4, %v2304_v15, %v1404_v63  ;;  %v2398_v31 = vsub.f32 %v626_v25, %v769_v3  ;;  %v865_v33 = vadd.f32 %v833_v21, %v769_v3  ;;  %v609_v24 = vrot.slane %v2386_v27, 1 }
  0x8e   :  { %v1409_v30 = vsel %vm1407_vm5, %v1408_v57, %v1406_v37  ;;  %v1246_v48 = vadd.f32 %v1214_v29, %v1182_v22  ;;  %v238_v50 = vand.u32 15, %v64_v2  ;;  %v705_v38 = vrot.slane %v2351_v0, 7  ;;  %v2465_v22 = vld [vmem:[%s2757_s0 + $0xd0] sm:$0xff] }
  0x8f   :  { %v1587_v34 = vpop.eup %1586  ;;  %1532 = vst.msk [vmem:[%s2758_s1 + $0x80] sm:$0xff] %vm1515_vm8, %v1409_v30  ;;  %v834_v17 = vmul.f32 2.0, %v2351_v0  ;;  %v2408_v18 = vadd.f32 %v865_v33, %v626_v25  ;;  %v1055_v39 = vadd.f32 %v991_v32, %v2398_v31  ;;  %v625_v36 = vsel %vm617_vm0, %v608_v35, %v609_v24 }
  0x90   :  { %v1411_v15 = vmul.f32 %v1587_v34, %v2334_v40  ;;  %v2413_v45 = vadd.f32 1e-06, %v1246_v48  ;;  %vm480_vm10 = vcmp.lt.s32.totalorder %v238_v50, 15  ;;  %v723_v28 = vsel %vm714_vm1, %v704_v26, %v705_v38 }
  0x91   :  { %v960_v42 = vmul.f32 2.0, %v2358_v9  ;;  %v1151_v52 = vsub.f32 %v2408_v18, %v2261_v44  ;;  %v1183_v41 = vmul.f32 %v1055_v39, %v1055_v39  ;;  %v673_v55 = vsel %vm480_vm10, %v625_v36, 0.0 }
  0x92   :  { %v1413_v46 = vsel %vm1412_vm6, %v2334_v40, %v1411_v15  ;;  %vm1419_vm11 = vcmp.eq.f32.partialorder %v2373_v14, inf  ;;  %vm1421_vm12 = vcmp.eq.f32.partialorder %v2373_v14, 0.0  ;;  %1590 = vrsqrt.f32 %v2413_v45 }
  0x93   :  { %v1416_v57 = vsel %vm1414_vm9, %v1415_v23, %v1413_v46  ;;  %v1422_v44 = vand.u32 2147483648, %v2373_v14  ;;  %v1215_v0 = vmul.f32 %v1151_v52, %v1151_v52  ;;  %v2438_v62 = vsub.f32 %v673_v55, %v723_v28 }
  0x94   :  { %1533 = vst.msk [vmem:[%s2758_s1 + $0x88] sm:$0xff] %vm1515_vm8, %v1416_v57  ;;  %v866_v59 = vadd.f32 %v834_v17, %v723_v28  ;;  %v992_v40 = vadd.f32 %v960_v42, %v2266_v54  ;;  %v65_v60 = vadd.s32 192, %v1650_v6  ;;  %v610_v51 = vrot.slane %v2426_v56, 1 }
  0x95   :  { %v706_v53 = vrot.slane %v2386_v27, 7  ;;  %v1589_v4 = vpop.eup %1588  ;;  %vm1426_vm13 = vcmp.eq.f32.partialorder %v2413_v45, inf  ;;  %v1247_v10 = vadd.f32 %v1215_v0, %v1183_v41  ;;  %v961_v35 = vmul.f32 2.0, %v2398_v31 }
  0x96   :  { %v2445_v11 = vadd.f32 %v866_v59, %v673_v55  ;;  %v1418_v26 = vmul.f32 %v1589_v4, %v2373_v14  ;;  %v1056_v58 = vadd.f32 %v992_v40, %v2438_v62  ;;  %v245_v49 = vand.u32 15, %v65_v60  ;;  %v2505_v55 = vld [vmem:[%s2757_s0 + $0xd8] sm:$0xff] }
  0x97   :  { %v835_v54 = vmul.f32 2.0, %v2386_v27  ;;  %v2451_v8 = vadd.f32 1e-06, %v1247_v10  ;;  %v624_v61 = vsel %vm617_vm0, %v609_v24, %v610_v51  ;;  %v722_v13 = vsel %vm714_vm1, %v705_v38, %v706_v53  ;;  %v2529_v10 = vld [vmem:[%s2757_s0 + $0xe0] sm:$0xff] }
  0x98   :  { %v1152_v12 = vsub.f32 %v2445_v11, %v2290_v43  ;;  %v1420_v21 = vsel %vm1419_vm11, %v2373_v14, %v1418_v26  ;;  %v1184_v63 = vmul.f32 %v1056_v58, %v1056_v58  ;;  %vm513_vm14 = vcmp.gt.s32.totalorder %v245_v49, 0 }
  0x99   :  { %v66_v25 = vadd.s32 200, %v1650_v6  ;;  %v1423_v43 = vsel %vm1421_vm12, %v1422_v44, %v1420_v21  ;;  %vm1428_vm15 = vcmp.eq.f32.partialorder %v2413_v45, 0.0  ;;  %1592 = vrsqrt.f32 %v2451_v8 }
  0x9a   :  { %v993_v27 = vadd.f32 %v961_v35, %v2310_v19  ;;  %1534 = vst.msk [vmem:[%s2758_s1 + $0x90] sm:$0xff] %vm1515_vm8, %v1423_v43  ;;  %v1429_v23 = vand.u32 2147483648, %v2413_v45  ;;  %v1216_v32 = vmul.f32 %v1152_v12, %v1152_v12  ;;  %v771_v37 = vsel %vm513_vm14, %v722_v13, 0.0 }
  0x9b   :  { %v252_v29 = vand.u32 15, %v66_v25  ;;  %v2478_v3 = vsub.f32 %v624_v61, %v771_v37  ;;  %v867_v14 = vadd.f32 %v835_v54, %v771_v37  ;;  %v611_v2 = vrot.slane %v2465_v22, 1 }
  0x9c   :  { %v707_v30 = vrot.slane %v2426_v56, 7  ;;  %v1591_v33 = vpop.eup %1590  ;;  %v1248_v24 = vadd.f32 %v1216_v32, %v1184_v63  ;;  %v836_v19 = vmul.f32 2.0, %v2426_v56  ;;  %v962_v34 = vmul.f32 2.0, %v2438_v62 }
  0x9d   :  { %vm482_vm2 = vcmp.lt.s32.totalorder %v252_v29, 15  ;;  %v1425_v48 = vmul.f32 %v1591_v33, %v2413_v45  ;;  %v2485_v50 = vadd.f32 %v867_v14, %v624_v61  ;;  %v1057_v38 = vadd.f32 %v993_v27, %v2478_v3 }
  0x9e   :  { %v623_v17 = vsel %vm617_vm0, %v610_v51, %v611_v2  ;;  %v2490_v15 = vadd.f32 1e-06, %v1248_v24  ;;  %v721_v36 = vsel %vm714_vm1, %v706_v53, %v707_v30  ;;  %v994_v28 = vadd.f32 %v962_v34, %v2358_v9 }
  0x9f   :  { %v675_v39 = vsel %vm482_vm2, %v623_v17, 0.0  ;;  %v1427_v42 = vsel %vm1426_vm13, %v2413_v45, %v1425_v48  ;;  %v1153_v46 = vsub.f32 %v2485_v50, %v2328_v20  ;;  %v1185_v52 = vmul.f32 %v1057_v38, %v1057_v38 }
  0xa0   :  { %v2500_v41 = vsub.f32 %v675_v39, %v721_v36  ;;  %v1430_v56 = vsel %vm1428_vm15, %v1429_v23, %v1427_v42  ;;  %vm1433_vm3 = vcmp.eq.f32.partialorder %v2451_v8, inf  ;;  %vm1435_vm4 = vcmp.eq.f32.partialorder %v2451_v8, 0.0 }
  0xa1   :  { %1594 = vrsqrt.f32 %v2490_v15  ;;  %1535 = vst.msk [vmem:[%s2758_s1 + $0x98] sm:$0xff] %vm1515_vm8, %v1430_v56  ;;  %v1436_v20 = vand.u32 2147483648, %v2451_v8  ;;  %v1217_v9 = vmul.f32 %v1153_v46, %v1153_v46  ;;  %v868_v57 = vadd.f32 %v836_v19, %v721_v36 }
  0xa2   :  { %v1058_v44 = vadd.f32 %v994_v28, %v2500_v41  ;;  %vm1440_vm5 = vcmp.eq.f32.partialorder %v2490_v15, inf  ;;  %v67_v45 = vadd.s32 208, %v1650_v6  ;;  %v612_v0 = vrot.slane %v2505_v55, 1 }
  0xa3   :  { %v708_v59 = vrot.slane %v2465_v22, 7  ;;  %v1593_v40 = vpop.eup %1592  ;;  %v1249_v60 = vadd.f32 %v1217_v9, %v1185_v52  ;;  %v2522_v51 = vadd.f32 %v868_v57, %v675_v39  ;;  %v837_v53 = vmul.f32 2.0, %v2465_v22  ;;  %v2581_v52 = vld [vmem:[%s2757_s0 + $0xe8] sm:$0xff] }
  0xa4   :  { %v963_v4 = vmul.f32 2.0, %v2478_v3  ;;  %v1432_v35 = vmul.f32 %v1593_v40, %v2451_v8  ;;  %v1186_v26 = vmul.f32 %v1058_v44, %v1058_v44  ;;  %v259_v58 = vand.u32 15, %v67_v45 }
  0xa5   :  { %v622_v49 = vsel %vm617_vm0, %v611_v2, %v612_v0  ;;  %v2534_v54 = vadd.f32 1e-06, %v1249_v60  ;;  %v1154_v12 = vsub.f32 %v2522_v51, %v2366_v47  ;;  %v720_v61 = vsel %vm714_vm1, %v707_v30, %v708_v59 }
  0xa6   :  { %v68_v13 = vadd.s32 216, %v1650_v6  ;;  %v1434_v21 = vsel %vm1433_vm3, %v2451_v8, %v1432_v35  ;;  %vm515_vm6 = vcmp.gt.s32.totalorder %v259_v58, 0  ;;  %v613_v63 = vrot.slane %v2529_v10, 1 }
  0xa7   :  { %v709_v22 = vrot.slane %v2505_v55, 7  ;;  %v1437_v25 = vsel %vm1435_vm4, %v1436_v20, %v1434_v21  ;;  %vm1442_vm7 = vcmp.eq.f32.partialorder %v2490_v15, 0.0  ;;  %1596 = vrsqrt.f32 %v2534_v54  ;;  %v2619_v21 = vld [vmem:[%s2757_s0 + $0xf0] sm:$0xff] }
  0xa8   :  { %v995_v47 = vadd.f32 %v963_v4, %v2398_v31  ;;  %1536 = vst.msk [vmem:[%s2758_s1 + $0xa0] sm:$0xff] %vm1515_vm8, %v1437_v25  ;;  %v1443_v43 = vand.u32 2147483648, %v2490_v15  ;;  %v1218_v27 = vmul.f32 %v1154_v12, %v1154_v12  ;;  %v773_v23 = vsel %vm515_vm6, %v720_v61, 0.0 }
  0xa9   :  { %v266_v32 = vand.u32 15, %v68_v13  ;;  %v2556_v37 = vsub.f32 %v622_v49, %v773_v23  ;;  %v869_v8 = vadd.f32 %v837_v53, %v773_v23  ;;  %v621_v29 = vsel %vm617_vm0, %v612_v0, %v613_v63 }
  0xaa   :  { %v719_v14 = vsel %vm714_vm1, %v708_v59, %v709_v22  ;;  %v1250_v2 = vadd.f32 %v1218_v27, %v1186_v26  ;;  %v838_v30 = vmul.f32 2.0, %v2505_v55  ;;  %v964_v33 = vmul.f32 2.0, %v2500_v41 }
  0xab   :  { %v1595_v31 = vpop.eup %1594  ;;  %vm484_vm9 = vcmp.lt.s32.totalorder %v266_v32, 15  ;;  %v2565_v19 = vadd.f32 %v869_v8, %v622_v49  ;;  %v1059_v34 = vadd.f32 %v995_v47, %v2556_v37  ;;  %v69_v55 = vadd.s32 224, %v1650_v6 }
  0xac   :  { %v1439_v24 = vmul.f32 %v1595_v31, %v2490_v15  ;;  %v677_v48 = vsel %vm484_vm9, %v621_v29, 0.0  ;;  %v2568_v38 = vadd.f32 1e-06, %v1250_v2  ;;  %v870_v39 = vadd.f32 %v838_v30, %v719_v14 }
  0xad   :  { %v2570_v17 = vsub.f32 %v677_v48, %v719_v14  ;;  %v996_v36 = vadd.f32 %v964_v33, %v2438_v62  ;;  %v1155_v42 = vsub.f32 %v2565_v19, %v2408_v18  ;;  %v1187_v46 = vmul.f32 %v1059_v34, %v1059_v34 }
  0xae   :  { %v1441_v28 = vsel %vm1440_vm5, %v2490_v15, %v1439_v24  ;;  %vm1447_vm10 = vcmp.eq.f32.partialorder %v2534_v54, inf  ;;  %vm1449_vm11 = vcmp.eq.f32.partialorder %v2534_v54, 0.0  ;;  %1598 = vrsqrt.f32 %v2568_v38 }
  0xaf   :  { %v1444_v56 = vsel %vm1442_vm7, %v1443_v43, %v1441_v28  ;;  %v1450_v18 = vand.u32 2147483648, %v2534_v54  ;;  %v1219_v62 = vmul.f32 %v1155_v42, %v1155_v42  ;;  %v2594_v20 = vadd.f32 %v870_v39, %v677_v48 }
  0xb0   :  { %1537 = vst.msk [vmem:[%s2758_s1 + $0xa8] sm:$0xff] %vm1515_vm8, %v1444_v56  ;;  %v1060_v9 = vadd.f32 %v996_v36, %v2570_v17  ;;  %v273_v15 = vand.u32 15, %v69_v55  ;;  %v614_v57 = vrot.slane %v2581_v52, 1  ;;  %v710_v44 = vrot.slane %v2529_v10, 7 }
  0xb1   :  { %v839_v45 = vmul.f32 2.0, %v2529_v10  ;;  %v1597_v0 = vpop.eup %1596  ;;  %v1251_v59 = vadd.f32 %v1219_v62, %v1187_v46  ;;  %v1156_v40 = vsub.f32 %v2594_v20, %v2445_v11  ;;  %v965_v53 = vmul.f32 2.0, %v2556_v37 }
  0xb2   :  { %v1188_v60 = vmul.f32 %v1060_v9, %v1060_v9  ;;  %v1446_v4 = vmul.f32 %v1597_v0, %v2534_v54  ;;  %vm517_vm12 = vcmp.gt.s32.totalorder %v273_v15, 0  ;;  %v620_v35 = vsel %vm617_vm0, %v613_v63, %v614_v57 }
  0xb3   :  { %v718_v26 = vsel %vm714_vm1, %v709_v22, %v710_v44  ;;  %v2608_v58 = vadd.f32 1e-06, %v1251_v59  ;;  %v1220_v10 = vmul.f32 %v1156_v40, %v1156_v40  ;;  %v997_v12 = vadd.f32 %v965_v53, %v2478_v3 }
  0xb4   :  { %v775_v49 = vsel %vm517_vm12, %v718_v26, 0.0  ;;  %v1448_v11 = vsel %vm1447_vm10, %v2534_v54, %v1446_v4  ;;  %v70_v63 = vadd.s32 232, %v1650_v6  ;;  %vm1454_vm13 = vcmp.eq.f32.partialorder %v2568_v38, inf }
  0xb5   :  { %v2614_v61 = vsub.f32 %v620_v35, %v775_v49  ;;  %v871_v13 = vadd.f32 %v839_v45, %v775_v49  ;;  %v1451_v22 = vsel %vm1449_vm11, %v1450_v18, %v1448_v11  ;;  %vm1456_vm14 = vcmp.eq.f32.partialorder %v2568_v38, 0.0  ;;  %v1616_v18 = vld [vmem:[%s2757_s0 + $0xf8] sm:$0xff] }
  0xb6   :  { %1600 = vrsqrt.f32 %v2608_v58  ;;  %1538 = vst.msk [vmem:[%s2758_s1 + $0xb0] sm:$0xff] %vm1515_vm8, %v1451_v22  ;;  %v1457_v3 = vand.u32 2147483648, %v2568_v38  ;;  %v1252_v25 = vadd.f32 %v1220_v10, %v1188_v60  ;;  %v280_v54 = vand.u32 15, %v70_v63 }
  0xb7   :  { %v2632_v47 = vadd.f32 %v871_v13, %v620_v35  ;;  %v1061_v43 = vadd.f32 %v997_v12, %v2614_v61  ;;  %v615_v27 = vrot.slane %v2619_v21, 1  ;;  %v711_v23 = vrot.slane %v2581_v52, 7 }
  0xb8   :  { %v840_v32 = vmul.f32 2.0, %v2581_v52  ;;  %v1599_v8 = vpop.eup %1598  ;;  %v2638_v29 = vadd.f32 1e-06, %v1252_v25  ;;  %v966_v2 = vmul.f32 2.0, %v2570_v17  ;;  %vm486_vm15 = vcmp.lt.s32.totalorder %v280_v54, 15 }
  0xb9   :  { %v1157_v14 = vsub.f32 %v2632_v47, %v2485_v50  ;;  %v1189_v31 = vmul.f32 %v1061_v43, %v1061_v43  ;;  %v1453_v30 = vmul.f32 %v1599_v8, %v2568_v38  ;;  %v619_v33 = vsel %vm617_vm0, %v614_v57, %v615_v27 }
  0xba   :  { %v717_v24 = vsel %vm714_vm1, %v710_v44, %v711_v23  ;;  %vm1461_vm2 = vcmp.eq.f32.partialorder %v2608_v58, inf  ;;  %vm1463_vm3 = vcmp.eq.f32.partialorder %v2608_v58, 0.0  ;;  %v1464_v34 = vand.u32 2147483648, %v2608_v58 }
  0xbb   :  { %1602 = vrsqrt.f32 %v2638_v29  ;;  %v1455_v50 = vsel %vm1454_vm13, %v2568_v38, %v1453_v30  ;;  %v1221_v48 = vmul.f32 %v1157_v14, %v1157_v14  ;;  %v679_v39 = vsel %vm486_vm15, %v619_v33, 0.0 }
  0xbc   :  { %v872_v36 = vadd.f32 %v840_v32, %v717_v24  ;;  %v1458_v28 = vsel %vm1456_vm14, %v1457_v3, %v1455_v50  ;;  %v2657_v42 = vsub.f32 %v679_v39, %v717_v24  ;;  %v998_v46 = vadd.f32 %v966_v2, %v2500_v41 }
  0xbd   :  { %v71_v52 = vadd.s32 240, %v1650_v6  ;;  %1539 = vst.msk [vmem:[%s2758_s1 + $0xb8] sm:$0xff] %vm1515_vm8, %v1458_v28  ;;  %v1253_v55 = vadd.f32 %v1221_v48, %v1189_v31  ;;  %v616_v38 = vrot.slane %v1616_v18, 1  ;;  %v712_v62 = vrot.slane %v2619_v21, 7 }
  0xbe   :  { %v2665_v56 = vadd.f32 %v872_v36, %v679_v39  ;;  %vm1468_vm4 = vcmp.eq.f32.partialorder %v2638_v29, inf  ;;  %v1062_v41 = vadd.f32 %v998_v46, %v2657_v42  ;;  %v967_v15 = vmul.f32 2.0, %v2614_v61 }
  0xbf   :  { %v287_v9 = vand.u32 15, %v71_v52  ;;  %v2674_v44 = vadd.f32 1e-06, %v1253_v55  ;;  %v716_v0 = vsel %vm714_vm1, %v711_v23, %v712_v62  ;;  %v841_v59 = vmul.f32 2.0, %v2619_v21 }
  0xc0   :  { %v1601_v57 = vpop.eup %1600  ;;  %v1158_v45 = vsub.f32 %v2665_v56, %v2522_v51  ;;  %v1190_v60 = vmul.f32 %v1062_v41, %v1062_v41  ;;  %v618_v53 = vsel %vm617_vm0, %v615_v27, %v616_v38  ;;  %vm1470_vm6 = vcmp.eq.f32.partialorder %v2638_v29, 0.0 }
  0xc1   :  { %v1460_v40 = vmul.f32 %v1601_v57, %v2608_v58  ;;  %vm519_vm5 = vcmp.gt.s32.totalorder %v287_v9, 0  ;;  %v1471_v4 = vand.u32 2147483648, %v2638_v29  ;;  %1604 = vrsqrt.f32 %v2674_v44 }
  0xc2   :  { %v999_v51 = vadd.f32 %v967_v15, %v2556_v37  ;;  %v1222_v26 = vmul.f32 %v1158_v45, %v1158_v45  ;;  %v777_v10 = vsel %vm519_vm5, %v716_v0, 0.0  ;;  %v72_v49 = vadd.s32 248, %v1650_v6 }
  0xc3   :  { %v1462_v35 = vsel %vm1461_vm2, %v2608_v58, %v1460_v40  ;;  %v809_v11 = vsub.f32 %v618_v53, %v777_v10  ;;  %v873_v13 = vadd.f32 %v841_v59, %v777_v10  ;;  %v649_v21 = vsel %vm617_vm0, %v616_v38, %v585_v7 }
  0xc4   :  { %v1465_v12 = vsel %vm1463_vm3, %v1464_v34, %v1462_v35  ;;  %v1254_v37 = vadd.f32 %v1222_v26, %v1190_v60  ;;  %v294_v22 = vand.u32 15, %v72_v49  ;;  %v715_v58 = vsel %vm714_vm1, %v712_v62, %v713_v16 }
  0xc5   :  { %v1603_v63 = vpop.eup %1602  ;;  %1540 = vst.msk [vmem:[%s2758_s1 + $0xc0] sm:$0xff] %vm1515_vm8, %v1465_v12  ;;  %v842_v3 = vmul.f32 2.0, %v1616_v18  ;;  %v905_v1 = vadd.f32 %v873_v13, %v618_v53  ;;  %v1063_v43 = vadd.f32 %v999_v51, %v809_v11  ;;  %v968_v7 = vmul.f32 2.0, %v2657_v42 }
  0xc6   :  { %v1467_v25 = vmul.f32 %v1603_v63, %v2638_v29  ;;  %v1286_v54 = vadd.f32 1e-06, %v1254_v37  ;;  %vm488_vm0 = vcmp.lt.s32.totalorder %v294_v22, 15  ;;  %v969_v23 = vmul.f32 2.0, %v809_v11 }
  0xc7   :  { %v874_v27 = vadd.f32 %v842_v3, %v715_v58  ;;  %v1159_v5 = vsub.f32 %v905_v1, %v2565_v19  ;;  %v1191_v8 = vmul.f32 %v1063_v43, %v1063_v43  ;;  %v681_v6 = vsel %vm488_vm0, %v649_v21, 0.0 }
  0xc8   :  { %v1469_v32 = vsel %vm1468_vm4, %v2638_v29, %v1467_v25  ;;  %vm1475_vm1 = vcmp.eq.f32.partialorder %v2674_v44, inf  ;;  %1606 = vrsqrt.f32 %v1286_v54  ;;  %vm1477_vm7 = vcmp.eq.f32.partialorder %v2674_v44, 0.0 }
  0xc9   :  { %v1472_v16 = vsel %vm1470_vm6, %v1471_v4, %v1469_v32  ;;  %v1223_v14 = vmul.f32 %v1159_v5, %v1159_v5  ;;  %v810_v31 = vsub.f32 %v681_v6, %v715_v58  ;;  %v906_v2 = vadd.f32 %v874_v27, %v681_v6 }
  0xca   :  { %1541 = vst.msk [vmem:[%s2758_s1 + $0xc8] sm:$0xff] %vm1515_vm8, %v1472_v16  ;;  %v1478_v19 = vand.u32 2147483648, %v2674_v44  ;;  %v1000_v30 = vadd.f32 %v968_v7, %v2570_v17  ;;  %v1001_v29 = vadd.f32 %v969_v23, %v2614_v61  ;;  %v1161_v33 = vsub.f32 0.0, %v2632_v47 }
  0xcb   :  { %v1605_v24 = vpop.eup %1604  ;;  %v1255_v34 = vadd.f32 %v1223_v14, %v1191_v8  ;;  %v1160_v50 = vsub.f32 %v906_v2, %v2594_v20  ;;  %v970_v48 = vmul.f32 2.0, %v810_v31  ;;  %v1162_v39 = vsub.f32 0.0, %v2665_v56 }
  0xcc   :  { %v1474_v36 = vmul.f32 %v1605_v24, %v2674_v44  ;;  %v1064_v28 = vadd.f32 %v1000_v30, %v810_v31  ;;  %v1193_v46 = vmul.f32 %v1001_v29, %v1001_v29  ;;  %v1225_v52 = vmul.f32 %v1161_v33, %v1161_v33 }
  0xcd   :  { %v1287_v55 = vadd.f32 1e-06, %v1255_v34  ;;  %v1224_v18 = vmul.f32 %v1160_v50, %v1160_v50  ;;  %v1002_v17 = vadd.f32 %v970_v48, %v2657_v42  ;;  %v1226_v56 = vmul.f32 %v1162_v39, %v1162_v39 }
  0xce   :  { %v1476_v61 = vsel %vm1475_vm1, %v2674_v44, %v1474_v36  ;;  %v1192_v47 = vmul.f32 %v1064_v28, %v1064_v28  ;;  %v1257_v38 = vadd.f32 %v1225_v52, %v1193_v46  ;;  %vm1482_vm9 = vcmp.eq.f32.partialorder %v1286_v54, inf }
  0xcf   :  { %v1479_v20 = vsel %vm1477_vm7, %v1478_v19, %v1476_v61  ;;  %1608 = vrsqrt.f32 %v1287_v55  ;;  %v1194_v9 = vmul.f32 %v1002_v17, %v1002_v17  ;;  %v1485_v15 = vand.u32 2147483648, %v1286_v54 }
  0xd0   :  { %1542 = vst.msk [vmem:[%s2758_s1 + $0xd0] sm:$0xff] %vm1515_vm8, %v1479_v20  ;;  %v1256_v62 = vadd.f32 %v1224_v18, %v1192_v47  ;;  %v1289_v41 = vadd.f32 1e-06, %v1257_v38  ;;  %vm1484_vm10 = vcmp.eq.f32.partialorder %v1286_v54, 0.0  ;;  %vm1489_vm11 = vcmp.eq.f32.partialorder %v1287_v55, inf }
  0xd1   :  { %v1258_v0 = vadd.f32 %v1226_v56, %v1194_v9  ;;  %v1492_v53 = vand.u32 2147483648, %v1287_v55  ;;  %vm1491_vm12 = vcmp.eq.f32.partialorder %v1287_v55, 0.0 }
  0xd2   :  { %v1607_v42 = vpop.eup %1606  ;;  %v1288_v57 = vadd.f32 1e-06, %v1256_v62  ;;  %1610 = vrsqrt.f32 %v1289_v41  ;;  %vm1503_vm13 = vcmp.eq.f32.partialorder %v1289_v41, inf  ;;  %v1506_v26 = vand.u32 2147483648, %v1289_v41 }
  0xd3   :  { %v1481_v45 = vmul.f32 %v1607_v42, %v1286_v54  ;;  %v1290_v59 = vadd.f32 1e-06, %v1258_v0  ;;  %vm1505_vm14 = vcmp.eq.f32.partialorder %v1289_v41, 0.0 }
  0xd4   :  { %1612 = vrsqrt.f32 %v1288_v57  ;;  %vm1496_vm15 = vcmp.eq.f32.partialorder %v1288_v57, inf  ;;  %v1499_v11 = vand.u32 2147483648, %v1288_v57  ;;  %vm1498_vm2 = vcmp.eq.f32.partialorder %v1288_v57, 0.0 }
  0xd5   :  { %v1483_v44 = vsel %vm1482_vm9, %v1286_v54, %v1481_v45  ;;  %1614 = vrsqrt.f32 %v1290_v59  ;;  %vm1510_vm3 = vcmp.eq.f32.partialorder %v1290_v59, inf  ;;  %v1513_v58 = vand.u32 2147483648, %v1290_v59 }
  0xd6   :  { %v1486_v40 = vsel %vm1484_vm10, %v1485_v15, %v1483_v44  ;;  %vm1512_vm4 = vcmp.eq.f32.partialorder %v1290_v59, 0.0 }
  0xd7   :  { %1543 = vst.msk [vmem:[%s2758_s1 + $0xd8] sm:$0xff] %vm1515_vm8, %v1486_v40 }
  0xd9   :  { %v1609_v60 = vpop.eup %1608 }
  0xda   :  { %v1488_v4 = vmul.f32 %v1609_v60, %v1287_v55 }
  0xdc   :  { %v1611_v51 = vpop.eup %1610  ;;  %v1490_v35 = vsel %vm1489_vm11, %v1287_v55, %v1488_v4 }
  0xdd   :  { %v1493_v10 = vsel %vm1491_vm12, %v1492_v53, %v1490_v35  ;;  %v1502_v49 = vmul.f32 %v1611_v51, %v1289_v41 }
  0xde   :  { %v1613_v12 = vpop.eup %1612  ;;  %1544 = vst.msk [vmem:[%s2758_s1 + $0xe0] sm:$0xff] %vm1515_vm8, %v1493_v10 }
  0xdf   :  { %v1495_v13 = vmul.f32 %v1613_v12, %v1288_v57  ;;  %v1504_v21 = vsel %vm1503_vm13, %v1289_v41, %v1502_v49  ;;  %v1615_v37 = vpop.eup %1614 }
  0xe0   :  { %v1507_v63 = vsel %vm1505_vm14, %v1506_v26, %v1504_v21  ;;  %v1509_v25 = vmul.f32 %v1615_v37, %v1290_v59 }
  0xe1   :  { %v1497_v22 = vsel %vm1496_vm15, %v1288_v57, %v1495_v13  ;;  %1546 = vst.msk [vmem:[%s2758_s1 + $0xf0] sm:$0xff] %vm1515_vm8, %v1507_v63 }
  0xe2   :  { %v1500_v3 = vsel %vm1498_vm2, %v1499_v11, %v1497_v22  ;;  %v1511_v1 = vsel %vm1510_vm3, %v1290_v59, %v1509_v25 }
  0xe3   :  { %1545 = vst.msk [vmem:[%s2758_s1 + $0xe8] sm:$0xff] %vm1515_vm8, %v1500_v3  ;;  %v1514_v43 = vsel %vm1512_vm4, %v1513_v58, %v1511_v1 }
  0xe4   :  { %1547 = vst.msk [vmem:[%s2758_s1 + $0xf8] sm:$0xff] %vm1515_vm8, %v1514_v43 }

</bundles_post_ra>
